<compile_context>
chip_gen: v7x
topology: tpu7x:2x2x1
jax: 0.10.0
libtpu: 0.0.40
codegen_flags: <defaults>
</compile_context>

<pallas_src>
import functools

import jax
import jax.numpy as jnp
from jax.experimental import pallas as pl
from jax.experimental.pallas import tpu as pltpu


# ----------------------------------------------------------------------------
# JAX glue: prior matching / target encoding (box_utils.match equivalent)
# Targets are produced directly in (feature, priors) layout for the kernel.
# ----------------------------------------------------------------------------
def point_form(boxes):
    return jnp.concatenate(
        [boxes[:, :2] - boxes[:, 2:] / 2.0, boxes[:, :2] + boxes[:, 2:] / 2.0],
        axis=1,
    )


def jaccard(box_a, box_b):
    max_xy = jnp.minimum(box_a[:, None, 2:], box_b[None, :, 2:])
    min_xy = jnp.maximum(box_a[:, None, :2], box_b[None, :, :2])
    inter_wh = jnp.maximum(max_xy - min_xy, 0.0)
    inter = inter_wh[..., 0] * inter_wh[..., 1]
    area_a = ((box_a[:, 2] - box_a[:, 0]) * (box_a[:, 3] - box_a[:, 1]))[:, None]
    area_b = ((box_b[:, 2] - box_b[:, 0]) * (box_b[:, 3] - box_b[:, 1]))[None, :]
    union = area_a + area_b - inter
    return inter / union


def encode(matched, priors, variances):
    """matched (P,4) xyxy, priors (P,4) cxcywh -> (4, P)."""
    g_cx = ((matched[:, 0] + matched[:, 2]) * 0.5 - priors[:, 0]) / (
        variances[0] * priors[:, 2])
    g_cy = ((matched[:, 1] + matched[:, 3]) * 0.5 - priors[:, 1]) / (
        variances[0] * priors[:, 3])
    g_w = jnp.log((matched[:, 2] - matched[:, 0]) / priors[:, 2]) / variances[1]
    g_h = jnp.log((matched[:, 3] - matched[:, 1]) / priors[:, 3]) / variances[1]
    return jnp.stack([g_cx, g_cy, g_w, g_h], axis=0)


def encode_landm(matched, priors, variances):
    """matched (P,10), priors (P,4) -> (10, P) rows ordered x1,y1,...,x5,y5."""
    num_priors = matched.shape[0]
    m = matched.reshape(num_priors, 5, 2)
    gx = (m[:, :, 0] - priors[:, 0:1]) / (variances[0] * priors[:, 2:3])  # (P,5)
    gy = (m[:, :, 1] - priors[:, 1:2]) / (variances[0] * priors[:, 3:4])  # (P,5)
    return jnp.stack([gx, gy], axis=2).reshape(num_priors, 10).T          # (10,P)


def match_single(threshold, truths, priors, variances, labels, landms):
    """One image: returns loc_t (4,P), conf_t (P,), landm_t (10,P)."""
    # TODO(synk): padded / zero-area GT rows produce NaN in jaccard & log(g_wh);
    # the PyTorch pipeline filters them before match — caller must do the same.
    num_obj = truths.shape[0]
    overlaps = jaccard(truths, point_form(priors))          # (O, P)
    best_prior_overlap = overlaps.max(axis=1)                # (O,)
    best_prior_idx = overlaps.argmax(axis=1)                 # (O,)
    valid_gt = best_prior_overlap >= 0.2
    any_valid = jnp.any(valid_gt)

    best_truth_overlap = overlaps.max(axis=0)                # (P,)
    best_truth_idx = overlaps.argmax(axis=0)                 # (P,)
    # index_fill_(0, best_prior_idx[valid], 2)
    best_truth_overlap = best_truth_overlap.at[best_prior_idx].max(
        jnp.where(valid_gt, 2.0, -jnp.inf))
    # ensure every gt matches its max-overlap prior (sequential, later j wins)
    for j in range(num_obj):
        best_truth_idx = best_truth_idx.at[best_prior_idx[j]].set(j)

    matches = truths[best_truth_idx]                         # (P, 4)
    conf = labels[best_truth_idx]                            # (P,)
    conf = jnp.where(best_truth_overlap < threshold, 0.0, conf)
    loc = encode(matches, priors, variances)                 # (4, P)
    landm = encode_landm(landms[best_truth_idx], priors, variances)  # (10, P)

    # early-return branch of match(): no valid gt -> all-background targets
    loc = jnp.where(any_valid, loc, 0.0)
    conf = jnp.where(any_valid, conf, 0.0)
    landm = jnp.where(any_valid, landm, 0.0)
    return loc, conf, landm


# ----------------------------------------------------------------------------
# Pallas kernel: per-prior conf loss + masked smooth-L1 per-tile partial sums
#   inputs  : (f, TILE) blocks, priors lane-dense, batch folded into lanes
#   outputs : lc (1, TILE) per-prior conf loss; two (1,128) per-tile partials
# ----------------------------------------------------------------------------
def _multibox_kernel(loc_p_ref, loc_t_ref, landm_p_ref, landm_t_ref,
                     conf_ref, conf_t_ref,
                     lc_ref, loss_l_ref, loss_landm_ref):
    conf_t = conf_t_ref[...]                 # (1, T) int32
    pos = conf_t != 0                        # positives (incl. label -1)
    pos1 = conf_t > 0                        # positives with valid landmarks

    def smooth_l1(d):
        ad = jnp.abs(d)
        return jnp.where(ad < 1.0, 0.5 * d * d, ad - 0.5)

    # localization smooth-L1 — single masked full-tile sum
    d_loc = loc_p_ref[...].astype(jnp.float32) - loc_t_ref[...]        # (4, T)
    loss_l = jnp.sum(jnp.where(pos, smooth_l1(d_loc), 0.0))

    # landmark smooth-L1 — single masked full-tile sum
    d_lm = landm_p_ref[...].astype(jnp.float32) - landm_t_ref[...]     # (10, T)
    loss_lm = jnp.sum(jnp.where(pos1, smooth_l1(d_lm), 0.0))

    # per-prior conf loss: logsumexp over classes - conf[target]
    conf = conf_ref[...].astype(jnp.float32)                           # (C, T)
    if conf.shape[0] == 2:
        a = conf[0:1, :]
        b = conf[1:2, :]
        lse = jnp.maximum(a, b) + jnp.log(1.0 + jnp.exp(-jnp.abs(a - b)))
        gathered = jnp.where(pos, b, a)        # target = 1 if pos else 0
    else:
        m = jnp.max(conf, axis=0, keepdims=True)
        lse = jnp.log(jnp.sum(jnp.exp(conf - m), axis=0, keepdims=True)) + m
        tgt = jnp.where(pos, 1, 0).astype(jnp.int32)
        cls = jax.lax.broadcasted_iota(jnp.int32, conf.shape, 0)
        gathered = jnp.sum(jnp.where(cls == tgt, conf, 0.0),
                           axis=0, keepdims=True)
    lc_ref[...] = lse - gathered                                       # (1, T)

    # per-tile partial sums, written in lane 0 only (wrapper does jnp.sum)
    lane = jax.lax.broadcasted_iota(jnp.int32, (1, 128), 1)
    loss_l_ref[...] = jnp.where(lane == 0, loss_l, 0.0)
    loss_landm_ref[...] = jnp.where(lane == 0, loss_lm, 0.0)


def _loss_kernel_call(loc_p, loc_t, landm_p, landm_t, conf, conf_t, *, tile):
    n_pad = loc_p.shape[1]
    c = conf.shape[0]
    num_tiles = n_pad // tile

    spec = lambda f: pl.BlockSpec((f, tile), lambda i: (0, i))
    part_spec = pl.BlockSpec((1, 128), lambda i: (0, i))

    bytes_accessed = int(
        (loc_p.size + landm_p.size + conf.size) * 2      # bf16 predictions
        + (loc_t.size + landm_t.size + conf_t.size) * 4  # f32/i32 targets
        + n_pad * 4 + 2 * num_tiles * 128 * 4)           # outputs
    cost = pl.CostEstimate(flops=int(60 * n_pad),
                           transcendentals=int(c * n_pad),
                           bytes_accessed=bytes_accessed)

    return pl.pallas_call(
        _multibox_kernel,
        out_shape=(
            jax.ShapeDtypeStruct((1, n_pad), jnp.float32),            # lc
            jax.ShapeDtypeStruct((1, num_tiles * 128), jnp.float32),  # loss_l parts
            jax.ShapeDtypeStruct((1, num_tiles * 128), jnp.float32),  # landm parts
        ),
        grid=(num_tiles,),
        in_specs=[spec(4), spec(4), spec(10), spec(10), spec(c), spec(1)],
        out_specs=(spec(1), part_spec, part_spec),
        compiler_params=pltpu.CompilerParams(
            dimension_semantics=("parallel",),       # per-tile partials -> 2 TCs on v7x
            vmem_limit_bytes=32 * 1024 * 1024),
        cost_estimate=cost,
    )(loc_p, loc_t, landm_p, landm_t, conf, conf_t)


# ----------------------------------------------------------------------------
# MultiBoxLoss forward (RetinaFace config: num_classes=2, thr=0.35, neg:pos=7)
# ----------------------------------------------------------------------------
def _round_up(x, m):
    return (x + m - 1) // m * m


def multibox_loss(loc_data, conf_data, landm_data, priors, targets,
                  num_classes=2, overlap_thresh=0.35, negpos_ratio=7,
                  variances=(0.1, 0.2), max_tile=8192):
    B, P, _ = loc_data.shape
    assert conf_data.shape == (B, P, num_classes)
    N = B * P

    truths = targets[:, :, :4]
    labels = targets[:, :, -1]
    landms = targets[:, :, 4:14]

    # targets built directly in (f, B, P) layout -> reshape only, no transpose
    loc_t, conf_t, landm_t = jax.vmap(
        lambda t, l, lm: match_single(overlap_thresh, t, priors, variances, l, lm),
        in_axes=(0, 0, 0), out_axes=(1, 0, 1),
    )(truths, labels, landms)                  # (4,B,P), (B,P), (10,B,P)

    conf_t_i = jnp.round(conf_t).astype(jnp.int32)          # (B, P) labels
    pos = conf_t_i != 0
    pos1 = conf_t_i > 0

    # kernel layout: (feature, B*P) lane-dense streams
    loc_t_k = loc_t.reshape(4, N)
    landm_t_k = landm_t.reshape(10, N)
    conf_t_k = conf_t_i.reshape(1, N)
    loc_p_k = loc_data.astype(jnp.bfloat16).transpose(2, 0, 1).reshape(4, N)
    landm_p_k = landm_data.astype(jnp.bfloat16).transpose(2, 0, 1).reshape(10, N)
    conf_k = conf_data.astype(jnp.bfloat16).transpose(2, 0, 1).reshape(num_classes, N)

    # pad the lane (prior) axis up to a multiple of the tile size
    tile = min(max_tile, _round_up(N, 128))
    n_pad = _round_up(N, tile)
    if n_pad != N:
        padf = lambda x: jnp.pad(x, ((0, 0), (0, n_pad - N)))
        loc_p_k, loc_t_k = padf(loc_p_k), padf(loc_t_k)
        landm_p_k, landm_t_k = padf(landm_p_k), padf(landm_t_k)
        conf_k, conf_t_k = padf(conf_k), padf(conf_t_k)

    lc_full, part_l, part_lm = _loss_kernel_call(
        loc_p_k, loc_t_k, landm_p_k, landm_t_k, conf_k, conf_t_k, tile=tile)

    # hard negative mining: one argsort + inverse-permutation scatter (exact
    # same ranks as argsort-of-argsort, half the sort work)
    lc = lc_full[0, :N].reshape(B, P)
    lc_mine = jnp.where(pos, 0.0, lc)                 # loss_c[pos] = 0
    order = jnp.argsort(-lc_mine, axis=1)             # descending
    row = jnp.arange(B)[:, None]
    ranks = jnp.broadcast_to(jnp.arange(P, dtype=jnp.int32), (B, P))
    idx_rank = jnp.zeros((B, P), jnp.int32).at[row, order].set(ranks)
    num_pos = jnp.sum(pos.astype(jnp.int32), axis=1, keepdims=True)
    num_neg = jnp.minimum(negpos_ratio * num_pos, P - 1)
    neg = idx_rank < num_neg
    sel = pos | neg

    # final conf loss reuses the per-prior lc already produced by the kernel
    loss_c_sum = jnp.sum(jnp.where(sel, lc, 0.0))

    Nf = jnp.maximum(jnp.sum(num_pos).astype(jnp.float32), 1.0)
    num_pos_landm = jnp.sum(pos1.astype(jnp.int32), axis=1, keepdims=True)
    N1 = jnp.maximum(jnp.sum(num_pos_landm).astype(jnp.float32), 1.0)

    loss_l = jnp.sum(part_l) / Nf
    loss_c = loss_c_sum / Nf
    loss_landm = jnp.sum(part_lm) / N1
    return loss_l, loss_c, loss_landm


# ----------------------------------------------------------------------------
if __name__ == "__main__":
    key = jax.random.PRNGKey(0)
    B, P, C, O = 2, 128, 2, 3
    k1, k2, k3, k4 = jax.random.split(key, 4)

    # network predictions
    loc_data = jax.random.normal(k1, (B, P, 4), jnp.float32) * 0.5
    conf_data = jax.random.normal(k2, (B, P, C), jnp.float32)
    landm_data = jax.random.normal(k3, (B, P, 10), jnp.float32) * 0.5

    # priors: 8x8 grid, two box sizes per cell -> 128 priors, (cx, cy, w, h)
    xs = (jnp.arange(8, dtype=jnp.float32) + 0.5) / 8.0
    cy, cx = jnp.meshgrid(xs, xs, indexing="ij")
    cxy = jnp.stack([cx.ravel(), cy.ravel()], axis=1)           # (64, 2)
    priors = jnp.concatenate(
        [jnp.concatenate([cxy, jnp.full((64, 2), 0.15, jnp.float32)], 1),
         jnp.concatenate([cxy, jnp.full((64, 2), 0.30, jnp.float32)], 1)],
        axis=0)                                                 # (128, 4)

    # ground truth: [B, O, 15] = 4 box corners + 10 landmarks + 1 label
    centers = jnp.array([[[0.30, 0.30], [0.60, 0.70], [0.80, 0.20]],
                         [[0.20, 0.80], [0.50, 0.50], [0.70, 0.40]]],
                        jnp.float32)
    half = 0.11
    boxes = jnp.concatenate([centers - half, centers + half], axis=-1)
    landms_gt = jax.random.uniform(k4, (B, O, 10), jnp.float32)
    labels_gt = jnp.array([[1.0, 1.0, -1.0], [1.0, -1.0, 1.0]],
                          jnp.float32)[..., None]
    targets = jnp.concatenate([boxes, landms_gt, labels_gt], axis=-1)

    loss_fn = jax.jit(functools.partial(
        multibox_loss, num_classes=C, overlap_thresh=0.35, negpos_ratio=7))
    loss_l, loss_c, loss_landm = loss_fn(
        loc_data, conf_data, landm_data, priors, targets)
    jax.block_until_ready((loss_l, loss_c, loss_landm))
    print("KERNEL_OK")
</pallas_src>

<mosaic_0001>
module attributes {stable_mosaic.version = 11 : i64} {
  func.func @_multibox_kernel(%arg0: i32, %arg1: memref<4x256xbf16, #tpu.memory_space<vmem>>, %arg2: memref<4x256xf32, #tpu.memory_space<vmem>>, %arg3: memref<10x256xbf16, #tpu.memory_space<vmem>>, %arg4: memref<10x256xf32, #tpu.memory_space<vmem>>, %arg5: memref<2x256xbf16, #tpu.memory_space<vmem>>, %arg6: memref<1x256xi32, #tpu.memory_space<vmem>>, %arg7: memref<1x256xf32, #tpu.memory_space<vmem>>, %arg8: memref<1x128xf32, #tpu.memory_space<vmem>>, %arg9: memref<1x128xf32, #tpu.memory_space<vmem>>) attributes {dimension_semantics = [#tpu.dimension_semantics<parallel>], iteration_bounds = array<i64: 1>, scalar_prefetch = 0 : i64, scratch_operands = 0 : i64, tpu.core_type = #tpu.core_type<tc>, window_params = [{transform_indices = @transform_0, window_bounds = array<i64: 4, 256>}, {transform_indices = @transform_1, window_bounds = array<i64: 4, 256>}, {transform_indices = @transform_2, window_bounds = array<i64: 10, 256>}, {transform_indices = @transform_3, window_bounds = array<i64: 10, 256>}, {transform_indices = @transform_4, window_bounds = array<i64: 2, 256>}, {transform_indices = @transform_5, window_bounds = array<i64: 1, 256>}, {transform_indices = @transform_6, window_bounds = array<i64: 1, 256>}, {transform_indices = @transform_7, window_bounds = array<i64: 1, 128>}, {transform_indices = @transform_8, window_bounds = array<i64: 1, 128>}]} {
    %c0 = arith.constant 0 : index
    %c0_0 = arith.constant 0 : index
    %0 = vector.load %arg6[%c0, %c0_0] : memref<1x256xi32, #tpu.memory_space<vmem>>, vector<1x256xi32>
    %c0_i32 = arith.constant 0 : i32
    %1 = vector.broadcast %c0_i32 : i32 to vector<1x256xi32>
    %2 = arith.cmpi ne, %0, %1 : vector<1x256xi32>
    %c0_i32_1 = arith.constant 0 : i32
    %3 = vector.broadcast %c0_i32_1 : i32 to vector<1x256xi32>
    %4 = arith.cmpi sgt, %0, %3 : vector<1x256xi32>
    %c0_2 = arith.constant 0 : index
    %c0_3 = arith.constant 0 : index
    %5 = vector.load %arg1[%c0_2, %c0_3] : memref<4x256xbf16, #tpu.memory_space<vmem>>, vector<4x256xbf16>
    %6 = arith.extf %5 : vector<4x256xbf16> to vector<4x256xf32>
    %c0_4 = arith.constant 0 : index
    %c0_5 = arith.constant 0 : index
    %7 = vector.load %arg2[%c0_4, %c0_5] : memref<4x256xf32, #tpu.memory_space<vmem>>, vector<4x256xf32>
    %8 = arith.subf %6, %7 : vector<4x256xf32>
    %9 = math.absf %8 : vector<4x256xf32>
    %cst = arith.constant 1.000000e+00 : f32
    %10 = vector.broadcast %cst : f32 to vector<4x256xf32>
    %11 = arith.cmpf olt, %9, %10 : vector<4x256xf32>
    %cst_6 = arith.constant 5.000000e-01 : f32
    %12 = vector.broadcast %cst_6 : f32 to vector<4x256xf32>
    %13 = arith.mulf %12, %8 : vector<4x256xf32>
    %14 = arith.mulf %13, %8 : vector<4x256xf32>
    %cst_7 = arith.constant 5.000000e-01 : f32
    %15 = vector.broadcast %cst_7 : f32 to vector<4x256xf32>
    %16 = arith.subf %9, %15 : vector<4x256xf32>
    %17 = arith.select %11, %14, %16 : vector<4x256xi1>, vector<4x256xf32>
    %cst_8 = arith.constant 0.000000e+00 : f32
    %18 = vector.shape_cast %2 : vector<1x256xi1> to vector<1x256xi1>
    %19 = vector.broadcast %18 : vector<1x256xi1> to vector<4x256xi1>
    %20 = vector.broadcast %cst_8 : f32 to vector<4x256xf32>
    %21 = arith.select %19, %17, %20 : vector<4x256xi1>, vector<4x256xf32>
    %22 = vector.shape_cast %21 : vector<4x256xf32> to vector<1x4x256xf32>
    %cst_9 = arith.constant dense<0.000000e+00> : vector<1xf32>
    %23 = vector.multi_reduction <add>, %22, %cst_9 [1, 2] : vector<1x4x256xf32> to vector<1xf32>
    %24 = vector.shape_cast %23 : vector<1xf32> to vector<1x1x1xf32>
    %25 = vector.extract %24[0, 0, 0] : f32 from vector<1x1x1xf32>
    %c0_10 = arith.constant 0 : index
    %c0_11 = arith.constant 0 : index
    %26 = vector.load %arg3[%c0_10, %c0_11] : memref<10x256xbf16, #tpu.memory_space<vmem>>, vector<10x256xbf16>
    %27 = arith.extf %26 : vector<10x256xbf16> to vector<10x256xf32>
    %c0_12 = arith.constant 0 : index
    %c0_13 = arith.constant 0 : index
    %28 = vector.load %arg4[%c0_12, %c0_13] : memref<10x256xf32, #tpu.memory_space<vmem>>, vector<10x256xf32>
    %29 = arith.subf %27, %28 : vector<10x256xf32>
    %30 = math.absf %29 : vector<10x256xf32>
    %cst_14 = arith.constant 1.000000e+00 : f32
    %31 = vector.broadcast %cst_14 : f32 to vector<10x256xf32>
    %32 = arith.cmpf olt, %30, %31 : vector<10x256xf32>
    %cst_15 = arith.constant 5.000000e-01 : f32
    %33 = vector.broadcast %cst_15 : f32 to vector<10x256xf32>
    %34 = arith.mulf %33, %29 : vector<10x256xf32>
    %35 = arith.mulf %34, %29 : vector<10x256xf32>
    %cst_16 = arith.constant 5.000000e-01 : f32
    %36 = vector.broadcast %cst_16 : f32 to vector<10x256xf32>
    %37 = arith.subf %30, %36 : vector<10x256xf32>
    %38 = arith.select %32, %35, %37 : vector<10x256xi1>, vector<10x256xf32>
    %cst_17 = arith.constant 0.000000e+00 : f32
    %39 = vector.shape_cast %4 : vector<1x256xi1> to vector<1x256xi1>
    %40 = vector.broadcast %39 : vector<1x256xi1> to vector<10x256xi1>
    %41 = vector.broadcast %cst_17 : f32 to vector<10x256xf32>
    %42 = arith.select %40, %38, %41 : vector<10x256xi1>, vector<10x256xf32>
    %43 = vector.shape_cast %42 : vector<10x256xf32> to vector<1x10x256xf32>
    %cst_18 = arith.constant dense<0.000000e+00> : vector<1xf32>
    %44 = vector.multi_reduction <add>, %43, %cst_18 [1, 2] : vector<1x10x256xf32> to vector<1xf32>
    %45 = vector.shape_cast %44 : vector<1xf32> to vector<1x1x1xf32>
    %46 = vector.extract %45[0, 0, 0] : f32 from vector<1x1x1xf32>
    %c0_19 = arith.constant 0 : index
    %c0_20 = arith.constant 0 : index
    %47 = vector.load %arg5[%c0_19, %c0_20] : memref<2x256xbf16, #tpu.memory_space<vmem>>, vector<2x256xbf16>
    %48 = arith.extf %47 : vector<2x256xbf16> to vector<2x256xf32>
    %49 = vector.extract_strided_slice %48 {offsets = [0, 0], sizes = [1, 256], strides = [1, 1]} : vector<2x256xf32> to vector<1x256xf32>
    %50 = vector.extract_strided_slice %48 {offsets = [1, 0], sizes = [1, 256], strides = [1, 1]} : vector<2x256xf32> to vector<1x256xf32>
    %51 = arith.maximumf %49, %50 : vector<1x256xf32>
    %52 = arith.subf %49, %50 : vector<1x256xf32>
    %53 = math.absf %52 : vector<1x256xf32>
    %cst_21 = arith.constant 0.000000e+00 : f32
    %54 = vector.broadcast %cst_21 : f32 to vector<1x256xf32>
    %55 = arith.subf %54, %53 : vector<1x256xf32>
    %56 = math.exp %55 : vector<1x256xf32>
    %cst_22 = arith.constant 1.000000e+00 : f32
    %57 = vector.broadcast %cst_22 : f32 to vector<1x256xf32>
    %58 = arith.addf %57, %56 : vector<1x256xf32>
    %59 = math.log %58 : vector<1x256xf32>
    %60 = arith.addf %51, %59 : vector<1x256xf32>
    %61 = arith.select %2, %50, %49 : vector<1x256xi1>, vector<1x256xf32>
    %62 = arith.subf %60, %61 : vector<1x256xf32>
    %c0_23 = arith.constant 0 : index
    %c0_24 = arith.constant 0 : index
    %63 = vector.load %arg7[%c0_23, %c0_24] : memref<1x256xf32, #tpu.memory_space<vmem>>, vector<1x256xf32>
    tpu.vector_store %arg7[%c0_23, %c0_24], %62 {strides = array<i32>} : memref<1x256xf32, #tpu.memory_space<vmem>>, vector<1x256xf32>,
    %64 = tpu.iota {dimensions = array<i32: 1>} : vector<1x128xi32>
    %c0_i32_25 = arith.constant 0 : i32
    %65 = vector.broadcast %c0_i32_25 : i32 to vector<1x128xi32>
    %66 = arith.cmpi eq, %64, %65 : vector<1x128xi32>
    %cst_26 = arith.constant 0.000000e+00 : f32
    %67 = vector.broadcast %25 : f32 to vector<1x128xf32>
    %68 = vector.broadcast %cst_26 : f32 to vector<1x128xf32>
    %69 = arith.select %66, %67, %68 : vector<1x128xi1>, vector<1x128xf32>
    %c0_27 = arith.constant 0 : index
    %c0_28 = arith.constant 0 : index
    %70 = vector.load %arg8[%c0_27, %c0_28] : memref<1x128xf32, #tpu.memory_space<vmem>>, vector<1x128xf32>
    tpu.vector_store %arg8[%c0_27, %c0_28], %69 {strides = array<i32>} : memref<1x128xf32, #tpu.memory_space<vmem>>, vector<1x128xf32>,
    %c0_i32_29 = arith.constant 0 : i32
    %71 = vector.broadcast %c0_i32_29 : i32 to vector<1x128xi32>
    %72 = arith.cmpi eq, %64, %71 : vector<1x128xi32>
    %cst_30 = arith.constant 0.000000e+00 : f32
    %73 = vector.broadcast %46 : f32 to vector<1x128xf32>
    %74 = vector.broadcast %cst_30 : f32 to vector<1x128xf32>
    %75 = arith.select %72, %73, %74 : vector<1x128xi1>, vector<1x128xf32>
    %c0_31 = arith.constant 0 : index
    %c0_32 = arith.constant 0 : index
    %76 = vector.load %arg9[%c0_31, %c0_32] : memref<1x128xf32, #tpu.memory_space<vmem>>, vector<1x128xf32>
    tpu.vector_store %arg9[%c0_31, %c0_32], %75 {strides = array<i32>} : memref<1x128xf32, #tpu.memory_space<vmem>>, vector<1x128xf32>,
    return
  }
  func.func @transform_0(%arg0: i32) -> (i32, i32) {
    %c0_i32 = arith.constant 0 : i32
    %c0_i32_0 = arith.constant 0 : i32
    return %c0_i32, %arg0 : i32, i32
  }
  func.func @transform_1(%arg0: i32) -> (i32, i32) {
    %c0_i32 = arith.constant 0 : i32
    %c0_i32_0 = arith.constant 0 : i32
    return %c0_i32, %arg0 : i32, i32
  }
  func.func @transform_2(%arg0: i32) -> (i32, i32) {
    %c0_i32 = arith.constant 0 : i32
    %c0_i32_0 = arith.constant 0 : i32
    return %c0_i32, %arg0 : i32, i32
  }
  func.func @transform_3(%arg0: i32) -> (i32, i32) {
    %c0_i32 = arith.constant 0 : i32
    %c0_i32_0 = arith.constant 0 : i32
    return %c0_i32, %arg0 : i32, i32
  }
  func.func @transform_4(%arg0: i32) -> (i32, i32) {
    %c0_i32 = arith.constant 0 : i32
    %c0_i32_0 = arith.constant 0 : i32
    return %c0_i32, %arg0 : i32, i32
  }
  func.func @transform_5(%arg0: i32) -> (i32, i32) {
    %c0_i32 = arith.constant 0 : i32
    %c0_i32_0 = arith.constant 0 : i32
    return %c0_i32, %arg0 : i32, i32
  }
  func.func @transform_6(%arg0: i32) -> (i32, i32) {
    %c0_i32 = arith.constant 0 : i32
    %c0_i32_0 = arith.constant 0 : i32
    return %c0_i32, %arg0 : i32, i32
  }
  func.func @transform_7(%arg0: i32) -> (i32, i32) {
    %c0_i32 = arith.constant 0 : i32
    %c0_i32_0 = arith.constant 0 : i32
    return %c0_i32, %arg0 : i32, i32
  }
  func.func @transform_8(%arg0: i32) -> (i32, i32) {
    %c0_i32 = arith.constant 0 : i32
    %c0_i32_0 = arith.constant 0 : i32
    return %c0_i32, %arg0 : i32, i32
  }
}

</mosaic_0001>

<bundles_post_ra>
// kernel: multibox_loss.1
= control target key start
LH: loop header
LB: loop body
LE: loop exit
PB: predicated region body
PF: predicated region fallthrough
CT: control target
= control target key end

     0   :  { %v40_v0 = vlaneseq  ;;  %v224_v7 = vmov 0   ;;  %vm55_vm4 = vcmask 1043456   ;;  %v225_v36 = vmov 1966171168   ;;  %s377_s0 = inlined_call_operand.vmem [shape: bf16[4,256], index: 0, kind: input, shape index: {}]   ;;  %s378_s1 = inlined_call_operand.vmem [shape: f32[4,256], index: 1, kind: input, shape index: {}]   ;;  %s379_s4 = inlined_call_operand.vmem [shape: bf16[2,256], index: 4, kind: input, shape index: {}]   ;;  %s380_s5 = inlined_call_operand.vmem [shape: s32[1,256], index: 5, kind: input, shape index: {}]   ;;  %s381_s2 = inlined_call_operand.vmem [shape: bf16[10,256], index: 2, kind: input, shape index: {}]   ;;  %s382_s3 = inlined_call_operand.vmem [shape: f32[10,256], index: 3, kind: input, shape index: {}]   ;;  %s383_s6 = inlined_call_operand.vmem [shape: f32[1,256], index: 6, kind: output, shape index: {0}]   ;;  %s384_s7 = inlined_call_operand.vmem [shape: f32[1,128], index: 7, kind: output, shape index: {1}]   ;;  %s385_s8 = inlined_call_operand.vmem [shape: f32[1,128], index: 8, kind: output, shape index: {2}]  }
   0x1   :  { %v275_v1 = vld [vmem:[%s380_s5] sm:$0x3]  ;;  %v69_v20 = vld [vmem:[%s381_s2 + $0x8] sm:$0x11]  ;;  %v76_v31 = vld [vmem:[%s382_s3 + $0x10] sm:$0x3]  ;;  %v153_v37 = vunpack.c.l.s4 %v225_v36 }
   0x2   :  { %v29_v2 = vld [vmem:[%s377_s0] sm:$0xf]  ;;  %vm27_vm0 = vcmp.ne.s32.totalorder %v275_v1, 0  ;;  %v285_v5 = vshrl.u32 %v40_v0, 7  ;;  %v75_v26 = vld [vmem:[%s382_s3 + $0x8] sm:$0xff]  ;;  %v72_v29 = vunpack.c.l.bf16 %v69_v20  ;;  %v73_v30 = vunpack.c.h.bf16 %v69_v20 }
   0x3   :  { %v31_v3 = vld [vmem:[%s378_s1] sm:$0xff]  ;;  %v30_v4 = vunpack.c.l.bf16 %v29_v2  ;;  %v39_v8 = vsel %vm27_vm0, 1, %v224_v7  ;;  %v77_v32 = vld [vmem:[%s382_s3 + $0x18] sm:$0x3]  ;;  %vm28_vm5 = vcmp.gt.s32.totalorder %v275_v1, 0  ;;  %vm122_vm10 = vcmask 1041408  }
   0x4   :  { %v136_v6 = vld [vmem:[%s379_s4] sm:$0x3]  ;;  %v42_v11 = vsub.s32 0, %v285_v5  ;;  %v46_v12 = vsub.s32 1, %v285_v5  ;;  %v80_v43 = vsub.f32 %v72_v29, %v76_v31  ;;  %v81_v44 = vsub.f32 %v73_v30, %v77_v32 }
   0x5   :  { %v293_v9 = vunpack.c.l.bf16 %v136_v6  ;;  %v32_v10 = vsub.f32 %v30_v4, %v31_v3  ;;  %v68_v13 = vld [vmem:[%s381_s2] sm:$0xff]  ;;  %v226_v29 = vmov 857870592   ;;  %vm184_vm13 = vcmp.lt.s32.totalorder %v40_v0, 256 }
   0x6   :  { %v43_v17 = vrot.slane %v39_v8, %v42_v11  ;;  %v47_v18 = vrot.slane %v39_v8, %v46_v12  ;;  %v70_v21 = vunpack.c.l.bf16 %v68_v13  ;;  %v74_v25 = vld [vmem:[%s382_s3] sm:$0xff]  ;;  %v71_v28 = vunpack.c.h.bf16 %v68_v13 }
   0x7   :  { %v139_v14 = vrot.slane %v293_v9, 7  ;;  %v33_v15 = vand.u32 2147483647, %v32_v10  ;;  %v35_v16 = vmul.f32 0.5, %v32_v10  ;;  %v84_v51 = vand.u32 2147483647, %v80_v43 }
   0x8   :  { %vm48_vm2 = vcmp.eq.s32.totalorder %v43_v17, 1  ;;  %vm49_vm3 = vcmp.eq.s32.totalorder %v47_v18, 1  ;;  %v78_v39 = vsub.f32 %v70_v21, %v74_v25  ;;  %v79_v40 = vsub.f32 %v71_v28, %v75_v26 }
   0x9   :  { %v305_v19 = vrot.slane %v139_v14, 2  ;;  %vm34_vm1 = vcmp.lt.f32.partialorder %v33_v15, 1.0  ;;  %v36_v22 = vmul.f32 %v35_v16, %v32_v10  ;;  %v208_v23 = vadd.f32 -0.5, %v33_v15 }
   0xa   :  { %v82_v46 = vand.u32 2147483647, %v78_v39  ;;  %v83_v47 = vand.u32 2147483647, %v79_v40  ;;  %v90_v48 = vmul.f32 0.5, %v78_v39  ;;  %v91_v55 = vmul.f32 0.5, %v79_v40 }
   0xb   :  { %v143_v24 = vsub.f32 %v293_v9, %v305_v19  ;;  %v38_v27 = vsel %vm34_vm1, %v36_v22, %v208_v23  ;;  %v85_v52 = vand.u32 2147483647, %v81_v44  ;;  %v92_v56 = vmul.f32 0.5, %v80_v43 }
   0xc   :  { %v51_v33 = vcombine.high %v38_v27, %v38_v27  ;;  %v53_v34 = vsel %vm48_vm2, %v38_v27, 0.0  ;;  %vm328_vm6 = vcmp.lt.f32.partialorder %v82_v46, 1.0  ;;  %vm332_vm7 = vcmp.lt.f32.partialorder %v83_v47, 1.0 }
   0xd   :  { %v144_v35 = vand.u32 2147483647, %v143_v24  ;;  %v56_v38 = vsel %vm55_vm4, %v53_v34, 0.0  ;;  %vm336_vm8 = vcmp.lt.f32.partialorder %v84_v51, 1.0  ;;  %vm340_vm9 = vcmp.lt.f32.partialorder %v85_v52, 1.0 }
   0xe   :  { %v54_v41 = vsel %vm49_vm3, %v51_v33, 0.0  ;;  %v93_v59 = vmul.f32 0.5, %v81_v44  ;;  %v94_v60 = vmul.f32 %v90_v48, %v78_v39  ;;  %v95_v61 = vmul.f32 %v91_v55, %v79_v40 }
   0xf   :  { %v145_v42 = vsub.f32 0.0, %v144_v35  ;;  %v57_v45 = vsel %vm55_vm4, %v54_v41, 0.0  ;;  %v96_v62 = vmul.f32 %v92_v56, %v80_v43  ;;  %v209_v63 = vadd.f32 -0.5, %v82_v46 }
  0x10   :  { %v58_v49 = vadd.f32 %v57_v45, %v56_v38  ;;  %v97_v2 = vmul.f32 %v93_v59, %v81_v44  ;;  %v210_v3 = vadd.f32 -0.5, %v83_v47  ;;  %v211_v4 = vadd.f32 -0.5, %v84_v51 }
  0x11   :  { %v146_v50 = vmul.f32 1.442695, %v145_v42  ;;  %v212_v6 = vadd.f32 -0.5, %v85_v52  ;;  %v106_v8 = vsel %vm28_vm5, 1, %v224_v7  ;;  %v102_v10 = vsel %vm328_vm6, %v94_v60, %v209_v63 }
  0x12   :  { %59 = vadd.xlane.f32.xlu0 %v58_v49  ;;  %v104_v13 = vsel %vm336_vm8, %v96_v62, %v211_v4  ;;  %v110_v14 = vrot.slane %v106_v8, %v42_v11  ;;  %v154_v15 = vunpack.c.0.s8 %v153_v37  ;;  %v103_v16 = vsel %vm332_vm7, %v95_v61, %v210_v3 }
  0x13   :  { %220 = vpow2.f32 %v146_v50  ;;  %v105_v17 = vsel %vm340_vm9, %v97_v2, %v212_v6  ;;  %v114_v7 = vrot.slane %v106_v8, %v46_v12  ;;  %v165_v30 = vunpack.c.l.s4 %v226_v29 }
  0x14   :  { %vm115_vm11 = vcmp.eq.s32.totalorder %v110_v14, 1  ;;  %v157_v11 = vsub.s32 %v154_v15, %v285_v5  ;;  %v142_v36 = vmax.f32 %v293_v9, %v305_v19  ;;  %v188_v53 = vand.u32 127, %v40_v0 }
  0x15   :  { %vm116_vm12 = vcmp.eq.s32.totalorder %v114_v7, 1  ;;  %v117_v18 = vsel %vm115_vm11, %v102_v10, 0.0  ;;  %v119_v20 = vsel %vm115_vm11, %v104_v13, 0.0  ;;  %v166_v32 = vunpack.c.0.s8 %v165_v30 }
  0x16   :  { %v118_v21 = vsel %vm116_vm12, %v103_v16, 0.0  ;;  %v120_v22 = vsel %vm116_vm12, %v105_v17, 0.0  ;;  %v123_v23 = vsel %vm122_vm10, %v119_v20, 0.0  ;;  %v158_v31 = vrot.slane %v293_v9, %v157_v11 }
  0x17   :  { %v121_v24 = vadd.f32 %v118_v21, %v117_v18  ;;  %v125_v26 = vsel %vm122_vm10, %v120_v22, 0.0  ;;  %v169_v34 = vsub.s32 %v166_v32, %v285_v5  ;;  %vm189_vm14 = vcmp.eq.s32.totalorder %v188_v53, 0 }
  0x18   :  { %v159_v33 = vcombine.high %v158_v31, %v158_v31 }
  0x19   :  { %v124_v28 = vadd.f32 %v123_v23, %v121_v24 }
  0x1a   :  { %v162_v35 = vsel %vm27_vm0, %v159_v33, %v158_v31 }
  0x1b   :  { %v126_v12 = vadd.f32 %v125_v26, %v124_v28  ;;  %v170_v39 = vrot.slane %v162_v35, %v169_v34 }
  0x1d   :  { %v221_v25 = vpop.eup %220  ;;  %127 = vadd.xlane.f32.xlu0 %v126_v12 }
  0x1e   :  { %v148_v27 = vadd.f32 1.0, %v221_v25 }
  0x20   :  { %222 = vlog2.f32 %v148_v27 }
  0x2a   :  { %v223_v37 = vpop.eup %222 }
  0x2b   :  { %v150_v38 = vmul.f32 0.6931472, %v223_v37 }
  0x2d   :  { %v151_v40 = vadd.f32 %v150_v38, %v142_v36 }
  0x2f   :  { %v172_v41 = vsub.f32 %v151_v40, %v170_v39 }
  0x31   :  { %v180_v42 = vrot.slane %v172_v41, %v157_v11 }
  0x33   :  { %186 = vst.msk [vmem:[%s383_s6] sm:$0x3] %vm184_vm13, %v180_v42 }
  0x9f   :  { %v60_v43 = vpop.xlane.xlu0 %59 }
  0xa0   :  { %v61_v5 = vrot.slane %v60_v43, 4 }
  0xa2   :  { %v62_v44 = vadd.f32 %v61_v5, %v60_v43 }
  0xa4   :  { %v63_v1 = vrot.slane %v62_v44, 2 }
  0xa6   :  { %v64_v45 = vadd.f32 %v63_v1, %v62_v44 }
  0xa8   :  { %v65_v46 = vrot.slane %v64_v45, 1 }
  0xaa   :  { %v66_v47 = vadd.f32 %v65_v46, %v64_v45  ;;  %v128_v9 = vpop.xlane.xlu0 %127 }
  0xab   :  { %v129_v19 = vrot.slane %v128_v9, 4 }
  0xac   :  { %213 = vpush %v66_v47 }
  0xad   :  { %v130_v48 = vadd.f32 %v129_v19, %v128_v9 }
  0xaf   :  { %v131_v49 = vrot.slane %v130_v48, 2 }
  0xb1   :  { %v132_v50 = vadd.f32 %v131_v49, %v130_v48 }
  0xb3   :  { %v133_v51 = vrot.slane %v132_v50, 1 }
  0xb5   :  { %v134_v52 = vadd.f32 %v133_v51, %v132_v50 }
  0xb7   :  { %215 = vpush %v134_v52 }
  0xdd   :  { %s214_s6 = spop %213 }
  0xde   :  { %v190_v54 = vstv %s214_s6 }
  0xdf   :  { %v191_v55 = vsel %vm189_vm14, %v190_v54, 0.0 }
  0xe0   :  { %192 = vst [vmem:[%s384_s7] sm:$0x1] %v191_v55 }
  0xe8   :  { %s216_s23 = spop %215 }
  0xe9   :  { %v193_v56 = vstv %s216_s23 }
  0xea   :  { %v194_v57 = vsel %vm189_vm14, %v193_v56, 0.0 }
  0xeb   :  { %195 = vst [vmem:[%s385_s8] sm:$0x1] %v194_v57 }

</bundles_post_ra>
